<compile_context>
chip_gen: v6e
topology: v6e:2x2x1
jax: 0.10.0
libtpu: 0.0.40
codegen_flags: <defaults>
</compile_context>

<pallas_src>
import math

import jax
import jax.numpy as jnp
from jax.experimental import pallas as pl
from jax.experimental.pallas import tpu as pltpu

_LANE = 128


def _round_up(x, m):
    return (x + m - 1) // m * m


def _make_gcn_kernel(has_bias):
    def kernel(*refs):
        if has_bias:
            adj_ref, x_ref, w_ref, b_ref, o_ref, acc_ref = refs
        else:
            adj_ref, x_ref, w_ref, o_ref, acc_ref = refs
            b_ref = None

        k = pl.program_id(1)

        @pl.when(k == 0)
        def _init():
            acc_ref[...] = jnp.zeros_like(acc_ref)

        # support_k = X[k-tile] @ W   (bf16 x bf16 -> f32 on the MXU)
        support = jnp.dot(x_ref[...], w_ref[...],
                          preferred_element_type=jnp.float32)
        # acc += A[i-tile, k-tile] @ support_k
        acc_ref[...] += jnp.dot(adj_ref[...], support.astype(adj_ref.dtype),
                                preferred_element_type=jnp.float32)

        @pl.when(k == pl.num_programs(1) - 1)
        def _finalize():
            out = acc_ref[...]
            if b_ref is not None:          # static (trace-time) branch
                out = out + b_ref[...]     # bias added in f32
            o_ref[...] = out.astype(o_ref.dtype)

    return kernel


def graph_convolution(x, adj, weight, bias=None, *, tm=256, tk=512,
                      compute_dtype=jnp.bfloat16):
    """GCN layer forward: adj @ (x @ weight) [+ bias].

    x:      [N, F_in]
    adj:    [N, N]   (dense adjacency)
    weight: [F_in, F_out]
    bias:   [F_out] or None
    """
    n, f_in = x.shape
    f_out = weight.shape[1]
    out_dtype = x.dtype

    # Tile sizes: multiples of 128, clamped so tiny graphs are not over-padded.
    tm = max(_LANE, min(_round_up(tm, _LANE), _round_up(n, _LANE)))
    tk = max(_LANE, min(_round_up(tk, _LANE), _round_up(n, _LANE)))

    n_pad = _round_up(n, math.lcm(tm, tk))
    f_in_pad = _round_up(f_in, _LANE)
    f_out_pad = _round_up(f_out, _LANE)   # lane-dense output stores

    # Zero-pad, then cast MXU operands to bf16 (accumulation stays in f32).
    x_p = jnp.pad(x, ((0, n_pad - n), (0, f_in_pad - f_in))).astype(compute_dtype)
    adj_p = jnp.pad(adj, ((0, n_pad - n), (0, n_pad - n))).astype(compute_dtype)
    w_p = jnp.pad(weight,
                  ((0, f_in_pad - f_in), (0, f_out_pad - f_out))).astype(compute_dtype)

    has_bias = bias is not None
    inputs = [adj_p, x_p, w_p]
    in_specs = [
        pl.BlockSpec((tm, tk), lambda i, k: (i, k)),                # adj tile
        pl.BlockSpec((tk, f_in_pad), lambda i, k: (k, 0)),          # x rows of k-tile
        pl.BlockSpec((f_in_pad, f_out_pad), lambda i, k: (0, 0)),   # weight (resident)
    ]
    if has_bias:
        b_p = jnp.pad(bias.astype(jnp.float32).reshape(1, f_out),
                      ((0, 0), (0, f_out_pad - f_out)))
        inputs.append(b_p)
        in_specs.append(pl.BlockSpec((1, f_out_pad), lambda i, k: (0, 0)))

    grid = (n_pad // tm, n_pad // tk)

    out_p = pl.pallas_call(
        _make_gcn_kernel(has_bias),
        out_shape=jax.ShapeDtypeStruct((n_pad, f_out_pad), out_dtype),
        grid=grid,
        in_specs=in_specs,
        out_specs=pl.BlockSpec((tm, f_out_pad), lambda i, k: (i, 0)),
        scratch_shapes=[pltpu.VMEM((tm, f_out_pad), jnp.float32)],
        compiler_params=pltpu.CompilerParams(
            dimension_semantics=("parallel", "arbitrary"),
            vmem_limit_bytes=32 * 1024 * 1024,
        ),
    )(*inputs)

    return out_p[:n, :f_out]


if __name__ == "__main__":
    # Shapes implied by the module: node features [N, F_in], dense adjacency [N, N].
    N, F_IN, F_OUT = 8, 16, 32

    key = jax.random.PRNGKey(0)
    kx, ka, kw, kb = jax.random.split(key, 4)

    # Deterministic parameter init mirroring reset_parameters():
    # uniform(-stdv, stdv) with stdv = 1/sqrt(out_features)
    stdv = 1.0 / math.sqrt(F_OUT)
    weight = jax.random.uniform(kw, (F_IN, F_OUT), jnp.float32, minval=-stdv, maxval=stdv)
    bias = jax.random.uniform(kb, (F_OUT,), jnp.float32, minval=-stdv, maxval=stdv)

    x = jax.random.normal(kx, (N, F_IN), jnp.float32)
    a_raw = jax.random.uniform(ka, (N, N), jnp.float32)
    adj = (a_raw + a_raw.T) / (2.0 * N)

    out = jax.block_until_ready(graph_convolution(x, adj, weight, bias))
    out_nb = jax.block_until_ready(graph_convolution(x, adj, weight, None))

    # Reference with the same bf16 operand rounding the kernel uses (f32 accumulation).
    xb = x.astype(jnp.bfloat16).astype(jnp.float32)
    ab = adj.astype(jnp.bfloat16).astype(jnp.float32)
    wb = weight.astype(jnp.bfloat16).astype(jnp.float32)
    support = (xb @ wb).astype(jnp.bfloat16).astype(jnp.float32)
    ref_nb = ab @ support
    ref = ref_nb + bias

    assert out.shape == (N, F_OUT)
    assert out_nb.shape == (N, F_OUT)
    assert jnp.allclose(out, ref, atol=2e-3, rtol=2e-2), "bias path mismatch vs reference"
    assert jnp.allclose(out_nb, ref_nb, atol=2e-3, rtol=2e-2), "no-bias path mismatch vs reference"
    # Sanity: also close to the full-f32 reference within bf16 rounding error.
    ref_f32 = adj @ (x @ weight) + bias
    assert jnp.allclose(out, ref_f32, atol=5e-2, rtol=5e-2), "drifted too far from f32 reference"
    print("KERNEL_OK")
</pallas_src>

<mosaic_0001>
module attributes {stable_mosaic.version = 11 : i64} {
  func.func @kernel(%arg0: i32, %arg1: i32, %arg2: memref<128x128xbf16, #tpu.memory_space<vmem>>, %arg3: memref<128x128xbf16, #tpu.memory_space<vmem>>, %arg4: memref<128x128xbf16, #tpu.memory_space<vmem>>, %arg5: memref<1x128xf32, #tpu.memory_space<vmem>>, %arg6: memref<128x128xf32, #tpu.memory_space<vmem>>, %arg7: memref<128x128xf32, #tpu.memory_space<vmem>>) attributes {dimension_semantics = [#tpu.dimension_semantics<parallel>, #tpu.dimension_semantics<arbitrary>], iteration_bounds = array<i64: 1, 1>, scalar_prefetch = 0 : i64, scratch_operands = 1 : i64, tpu.core_type = #tpu.core_type<tc>, window_params = [{transform_indices = @transform_0, window_bounds = array<i64: 128, 128>}, {transform_indices = @transform_1, window_bounds = array<i64: 128, 128>}, {pipeline_mode = #tpu.pipeline_mode<synchronous>, transform_indices = @transform_2, window_bounds = array<i64: 128, 128>}, {pipeline_mode = #tpu.pipeline_mode<synchronous>, transform_indices = @transform_3, window_bounds = array<i64: 1, 128>}, {transform_indices = @transform_4, window_bounds = array<i64: 128, 128>}]} {
    %c0_i32 = arith.constant 0 : i32
    %0 = arith.cmpi eq, %arg1, %c0_i32 : i32
    %1 = arith.extui %0 : i1 to i32
    %c0_i32_0 = arith.constant 0 : i32
    %2 = arith.cmpi ne, %1, %c0_i32_0 : i32
    scf.if %2 {
      %cst_13 = arith.constant 0.000000e+00 : f32
      %15 = vector.broadcast %cst_13 : f32 to vector<128x128xf32>
      %c0_14 = arith.constant 0 : index
      %c0_15 = arith.constant 0 : index
      %16 = vector.load %arg7[%c0_14, %c0_15] : memref<128x128xf32, #tpu.memory_space<vmem>>, vector<128x128xf32>
      tpu.vector_store %arg7[%c0_14, %c0_15], %15 {strides = array<i32>} : memref<128x128xf32, #tpu.memory_space<vmem>>, vector<128x128xf32>,
    } else {
    }
    %c0 = arith.constant 0 : index
    %c0_1 = arith.constant 0 : index
    %3 = vector.load %arg3[%c0, %c0_1] : memref<128x128xbf16, #tpu.memory_space<vmem>>, vector<128x128xbf16>
    %c0_2 = arith.constant 0 : index
    %c0_3 = arith.constant 0 : index
    %4 = vector.load %arg4[%c0_2, %c0_3] : memref<128x128xbf16, #tpu.memory_space<vmem>>, vector<128x128xbf16>
    %cst = arith.constant dense<0.000000e+00> : vector<128x128xf32>
    %5 = tpu.matmul %3, %4, %cst {dimension_numbers = #tpu.dot_dimension_numbers<[1], [0], [0], [1], [0, 0, 1, 1], [], []>} : vector<128x128xbf16>, vector<128x128xbf16>, vector<128x128xf32> -> vector<128x128xf32>
    %c0_4 = arith.constant 0 : index
    %c0_5 = arith.constant 0 : index
    %6 = vector.load %arg7[%c0_4, %c0_5] : memref<128x128xf32, #tpu.memory_space<vmem>>, vector<128x128xf32>
    %c0_6 = arith.constant 0 : index
    %c0_7 = arith.constant 0 : index
    %7 = vector.load %arg2[%c0_6, %c0_7] : memref<128x128xbf16, #tpu.memory_space<vmem>>, vector<128x128xbf16>
    %8 = arith.truncf %5 : vector<128x128xf32> to vector<128x128xbf16>
    %cst_8 = arith.constant dense<0.000000e+00> : vector<128x128xf32>
    %9 = tpu.matmul %7, %8, %cst_8 {dimension_numbers = #tpu.dot_dimension_numbers<[1], [0], [0], [1], [0, 0, 1, 1], [], []>} : vector<128x128xbf16>, vector<128x128xbf16>, vector<128x128xf32> -> vector<128x128xf32>
    %10 = arith.addf %6, %9 : vector<128x128xf32>
    %c0_9 = arith.constant 0 : index
    %c0_10 = arith.constant 0 : index
    %11 = vector.load %arg7[%c0_9, %c0_10] : memref<128x128xf32, #tpu.memory_space<vmem>>, vector<128x128xf32>
    tpu.vector_store %arg7[%c0_9, %c0_10], %10 {strides = array<i32>} : memref<128x128xf32, #tpu.memory_space<vmem>>, vector<128x128xf32>,
    %c0_i32_11 = arith.constant 0 : i32
    %12 = arith.cmpi eq, %arg1, %c0_i32_11 : i32
    %13 = arith.extui %12 : i1 to i32
    %c0_i32_12 = arith.constant 0 : i32
    %14 = arith.cmpi ne, %13, %c0_i32_12 : i32
    scf.if %14 {
      %c0_13 = arith.constant 0 : index
      %c0_14 = arith.constant 0 : index
      %15 = vector.load %arg7[%c0_13, %c0_14] : memref<128x128xf32, #tpu.memory_space<vmem>>, vector<128x128xf32>
      %c0_15 = arith.constant 0 : index
      %c0_16 = arith.constant 0 : index
      %16 = vector.load %arg5[%c0_15, %c0_16] : memref<1x128xf32, #tpu.memory_space<vmem>>, vector<1x128xf32>
      %17 = vector.broadcast %16 : vector<1x128xf32> to vector<128x128xf32>
      %18 = arith.addf %15, %17 : vector<128x128xf32>
      %c0_17 = arith.constant 0 : index
      %c0_18 = arith.constant 0 : index
      %19 = vector.load %arg6[%c0_17, %c0_18] : memref<128x128xf32, #tpu.memory_space<vmem>>, vector<128x128xf32>
      tpu.vector_store %arg6[%c0_17, %c0_18], %18 {strides = array<i32>} : memref<128x128xf32, #tpu.memory_space<vmem>>, vector<128x128xf32>,
    } else {
    }
    return
  }
  func.func @transform_0(%arg0: i32, %arg1: i32) -> (i32, i32) {
    %c0_i32 = arith.constant 0 : i32
    return %arg0, %arg1 : i32, i32
  }
  func.func @transform_1(%arg0: i32, %arg1: i32) -> (i32, i32) {
    %c0_i32 = arith.constant 0 : i32
    %c0_i32_0 = arith.constant 0 : i32
    return %arg1, %c0_i32 : i32, i32
  }
  func.func @transform_2(%arg0: i32, %arg1: i32) -> (i32, i32) {
    %c0_i32 = arith.constant 0 : i32
    %c0_i32_0 = arith.constant 0 : i32
    %c0_i32_1 = arith.constant 0 : i32
    return %c0_i32, %c0_i32_0 : i32, i32
  }
  func.func @transform_3(%arg0: i32, %arg1: i32) -> (i32, i32) {
    %c0_i32 = arith.constant 0 : i32
    %c0_i32_0 = arith.constant 0 : i32
    %c0_i32_1 = arith.constant 0 : i32
    return %c0_i32, %c0_i32_0 : i32, i32
  }
  func.func @transform_4(%arg0: i32, %arg1: i32) -> (i32, i32) {
    %c0_i32 = arith.constant 0 : i32
    %c0_i32_0 = arith.constant 0 : i32
    return %arg0, %c0_i32 : i32, i32
  }
}

</mosaic_0001>

<bundles_post_ra>
// kernel: tpu_custom_call.1
= control target key start
LH: loop header
LB: loop body
LE: loop exit
PB: predicated region body
PF: predicated region fallthrough
CT: control target
= control target key end

     0   :  { %9 = vsyncpa [#allocation4], 0  ;;  %s885_s0 = inlined_call_operand.hbm [shape: bf16[128,128], index: 0, kind: input, shape index: {}]   ;;  %s886_s1 = inlined_call_operand.hbm [shape: bf16[128,128], index: 1, kind: input, shape index: {}]   ;;  %s887_s2 = inlined_call_operand.hbm [shape: bf16[128,128], index: 2, kind: input, shape index: {}]   ;;  %s888_s3 = inlined_call_operand.vmem [shape: f32[1,128], index: 3, kind: input, shape index: {}]   ;;  %s889_s4 = inlined_call_operand.hbm [shape: f32[128,128], index: 4, kind: output, shape index: {}]  }
   0x1   :  { %10 = vsyncpa [#allocation7], 0 }
   0x2   :  { %11 = vsyncpa [#allocation5], 0  ;;  %s837_s15 = smov [#allocation6]   ;;  %s838_s17 = smov [#allocation3]  }
   0x3   :  { %s29_s16 = sshll.u32 %s837_s15, 4  ;;  %s17_s18 = sshll.u32 %s838_s17, 4  ;;  %s30_s16 = int_to_ptr.vmem [resolvable:$true] %s29_s16  ;;  %s18_s18 = int_to_ptr.vmem [resolvable:$true] %s17_s18 }
   0x4   :  { %s759_s19 = scalar_lea.vmem %s30_s16, 1024  ;;  %p764_p1 = scmp.lt.s32.totalorder %s30_s16, %s30_s16 }
   0x5   :  { %p760_p0 = scmp.ne.s32.totalorder %s30_s16, %s759_s19  ;;  %p765_p2 = scmp.lt.s32.totalorder %s759_s19, %s759_s19 }
   0x7   :  { %p766_p3 = por %p765_p2, %p764_p1 }
   0x9   :  { %p767_p4 = pnand %p766_p3, %p760_p0 }
   0xb   :  { %770 = shalt.err (!%p767_p4)
}
   0xc   :  { %s839_s20 = smov 64   ;;  %s840_s21 = smov 4  }
   0xd   :  { %35 = dma.hbm_to_vmem [thread:$0]  %s886_s1, 1024, %s30_s16, [#allocation7], %s839_s20, %s839_s20, %s840_s21  }
   0xe   :  { %s779_s24 = scalar_lea.vmem %s18_s18, 1024  ;;  %p784_p6 = scmp.lt.s32.totalorder %s18_s18, %s18_s18 }
   0xf   :  { %p780_p5 = scmp.ne.s32.totalorder %s18_s18, %s779_s24  ;;  %p785_p7 = scmp.lt.s32.totalorder %s779_s24, %s779_s24 }
  0x11   :  { %p786_p8 = por %p785_p7, %p784_p6 }
  0x13   :  { %p787_p9 = pnand %p786_p8, %p780_p5 }
  0x15   :  { %790 = shalt.err (!%p787_p9)
}
  0x16   :  { %23 = dma.hbm_to_vmem [thread:$0]  %s885_s0, 1024, %s18_s18, [#allocation4], %s839_s20, %s839_s20, %s840_s21  }
  0x17   :  { %s841_s27 = smov [#allocation8]  }
  0x18   :  { %s41_s28 = sshll.u32 %s841_s27, 4  ;;  %s42_s28 = int_to_ptr.vmem [resolvable:$true] %s41_s28 }
  0x19   :  { %s799_s29 = scalar_lea.vmem %s42_s28, 1024  ;;  %p804_p11 = scmp.lt.s32.totalorder %s42_s28, %s42_s28 }
  0x1a   :  { %p800_p10 = scmp.ne.s32.totalorder %s42_s28, %s799_s29  ;;  %p805_p12 = scmp.lt.s32.totalorder %s799_s29, %s799_s29 }
  0x1c   :  { %p806_p13 = por %p805_p12, %p804_p11 }
  0x1e   :  { %p807_p0 = pnand %p806_p13, %p800_p10 }
  0x20   :  { %810 = shalt.err (!%p807_p0)
}
  0x21   :  { %47 = dma.hbm_to_vmem [thread:$0]  %s887_s2, 1024, %s42_s28, [#allocation7], %s839_s20, %s839_s20, %s840_s21  }
  0x22   :  { %831 = dma.done.wait [#allocation4], 1024  }
  0x23   :  { %832 = vsyncadd [#allocation4], 4294966272 }
  0x24   :  { %833 = dma.done.wait [#allocation7], 2048  }
  0x25   :  { %834 = vsyncadd [#allocation7], 4294965248  ;;  %v727_v0 = vld [vmem:[#allocation8 + $0x38] sm:$0xff]   ;;  %v728_v1 = vld [vmem:[#allocation8 + $0x30] sm:$0xff]  }
  0x26   :  { %655 = vmatprep.subr.bf16.mxu0 %v727_v0  ;;  %v729_v2 = vld [vmem:[#allocation8 + $0x28] sm:$0xff]   ;;  %v730_v3 = vld [vmem:[#allocation8 + $0x20] sm:$0xff]   ;;  %v731_v5 = vld [vmem:[#allocation8 + $0x18] sm:$0xff]  }
  0x27   :  { %656 = vmatpush3.bf16.msra.mxu0 %v727_v0  ;;  %v735_v4 = vld [vmem:[#allocation6] sm:$0xff]   ;;  %v732_v6 = vld [vmem:[#allocation8 + $0x10] sm:$0xff]   ;;  %v733_v7 = vld [vmem:[#allocation8 + $0x8] sm:$0xff]  }
  0x28   :  { %657 = vmatprep.subr.bf16.mxu0 %v728_v1  ;;  %671 = vmatprep.mubr.bf16.mxu0 %v735_v4  ;;  %v734_v8 = vld [vmem:[#allocation8] sm:$0xff]   ;;  %v736_v9 = vld [vmem:[#allocation6 + $0x8] sm:$0xff]   ;;  %v737_v10 = vld [vmem:[#allocation6 + $0x10] sm:$0xff]  }
  0x29   :  { %v738_v11 = vld [vmem:[#allocation6 + $0x18] sm:$0xff]   ;;  %v739_v12 = vld [vmem:[#allocation6 + $0x20] sm:$0xff]   ;;  %v740_v13 = vld [vmem:[#allocation6 + $0x28] sm:$0xff]  }
  0x2a   :  { %v741_v14 = vld [vmem:[#allocation6 + $0x30] sm:$0xff]   ;;  %v742_v15 = vld [vmem:[#allocation6 + $0x38] sm:$0xff]   ;;  %v743_v16 = vld [vmem:[#allocation3] sm:$0xff]  }
  0x2b   :  { %658 = vmatpush3.bf16.msra.mxu0 %v728_v1  ;;  %703 = vmatprep.mubr.bf16.mxu1 %v743_v16  ;;  %v744_v41 = vld [vmem:[#allocation3 + $0x8] sm:$0xff]   ;;  %v745_v42 = vld [vmem:[#allocation3 + $0x10] sm:$0xff]   ;;  %v746_v43 = vld [vmem:[#allocation3 + $0x18] sm:$0xff]  }
  0x2c   :  { %659 = vmatprep.subr.bf16.mxu0 %v729_v2  ;;  %v747_v44 = vld [vmem:[#allocation3 + $0x20] sm:$0xff]   ;;  %v748_v45 = vld [vmem:[#allocation3 + $0x28] sm:$0xff]   ;;  %v749_v46 = vld [vmem:[#allocation3 + $0x30] sm:$0xff]  }
  0x2d   :  { %v750_v47 = vld [vmem:[#allocation3 + $0x38] sm:$0xff]   ;;  %v622_v48 = vld [vmem:[%s888_s3] ss:$0 sm:$0xff]  ;;  %s842_s3 = smov [#allocation9]  }
  0x2e   :  { %s585_s5 = sshll.u32 %s842_s3, 4  ;;  %s586_s5 = int_to_ptr.vmem [resolvable:$true] %s585_s5 }
  0x2f   :  { %660 = vmatpush3.bf16.msra.mxu0 %v729_v2  ;;  %s811_s6 = scalar_lea.vmem %s586_s5, 2048  ;;  %p816_p2 = scmp.lt.s32.totalorder %s586_s5, %s586_s5 }
  0x30   :  { %661 = vmatprep.subr.bf16.mxu0 %v730_v3  ;;  %p812_p1 = scmp.ne.s32.totalorder %s586_s5, %s811_s6  ;;  %p817_p3 = scmp.lt.s32.totalorder %s811_s6, %s811_s6 }
  0x32   :  { %p818_p4 = por %p817_p3, %p816_p2 }
  0x33   :  { %662 = vmatpush3.bf16.msra.mxu0 %v730_v3 }
  0x34   :  { %663 = vmatprep.subr.bf16.mxu0 %v731_v5  ;;  %p819_p5 = pnand %p818_p4, %p812_p1 }
  0x37   :  { %664 = vmatpush3.bf16.msra.mxu0 %v731_v5 }
  0x38   :  { %665 = vmatprep.subr.bf16.mxu0 %v732_v6 }
  0x3b   :  { %666 = vmatpush3.bf16.msra.mxu0 %v732_v6 }
  0x3c   :  { %667 = vmatprep.subr.bf16.mxu0 %v733_v7 }
  0x3f   :  { %668 = vmatpush3.bf16.msra.mxu0 %v733_v7 }
  0x40   :  { %669 = vmatprep.subr.bf16.mxu0 %v734_v8 }
  0x43   :  { %670 = vmatpush3.bf16.msra.mxu0 %v734_v8 }
  0x46   :  { %672 = vmatmul.mubr.bf16.vlgmr.msra.gmra.mxu0 %v736_v9 }
  0x47   :  { %675 = vmatprep.mubr.bf16.mxu0 %v737_v10 }
  0x4e   :  { %676 = vmatmul.mubr.bf16.gmra.mxu0 %v738_v11 }
  0x4f   :  { %679 = vmatprep.mubr.bf16.mxu0 %v739_v12 }
  0x56   :  { %680 = vmatmul.mubr.bf16.gmra.mxu0 %v740_v13 }
  0x57   :  { %683 = vmatprep.mubr.bf16.mxu0 %v741_v14 }
  0x5e   :  { %684 = vmatmul.mubr.bf16.gmra.mxu0 %v742_v15 }
 0x106   :  { %v673_v17 = vpop.f32.mrf.mxu0 }
 0x108   :  { %v242_v18 = vpop.f32.mrf.mxu0 }
 0x10a   :  { %v674_v19 = vpop.f32.mrf.mxu0 }
 0x10b   :  { %v338_v39 = vpack.c.bf16 %v674_v19, %v673_v17 }
 0x10c   :  { %v245_v20 = vpop.f32.mrf.mxu0 }
 0x10d   :  { %v337_v40 = vpack.c.bf16 %v245_v20, %v242_v18 }
 0x10e   :  { %v677_v21 = vpop.f32.mrf.mxu0 }
 0x110   :  { %v258_v22 = vpop.f32.mrf.mxu0 }
 0x112   :  { %v678_v23 = vpop.f32.mrf.mxu0 }
 0x113   :  { %v340_v37 = vpack.c.bf16 %v678_v23, %v677_v21 }
 0x114   :  { %v261_v24 = vpop.f32.mrf.mxu0 }
 0x115   :  { %v339_v38 = vpack.c.bf16 %v261_v24, %v258_v22 }
 0x116   :  { %v681_v25 = vpop.f32.mrf.mxu0 }
 0x118   :  { %v274_v26 = vpop.f32.mrf.mxu0 }
 0x11a   :  { %v682_v27 = vpop.f32.mrf.mxu0 }
 0x11b   :  { %v342_v35 = vpack.c.bf16 %v682_v27, %v681_v25 }
 0x11c   :  { %v277_v28 = vpop.f32.mrf.mxu0 }
 0x11d   :  { %v341_v36 = vpack.c.bf16 %v277_v28, %v274_v26 }
 0x11e   :  { %v685_v29 = vpop.f32.mrf.mxu0 }
 0x120   :  { %v290_v30 = vpop.f32.mrf.mxu0 }
 0x122   :  { %v686_v31 = vpop.f32.mrf.mxu0 }
 0x123   :  { %v344_v32 = vpack.c.bf16 %v686_v31, %v685_v29 }
 0x124   :  { %v293_v33 = vpop.f32.mrf.mxu0 }
 0x125   :  { %v343_v34 = vpack.c.bf16 %v293_v33, %v290_v30  ;;  %687 = vmatprep.subr.bf16.mxu1 %v344_v32 }
 0x126   :  { %688 = vmatpush3.bf16.msra.mxu1 %v344_v32 }
 0x127   :  { %689 = vmatprep.subr.bf16.mxu1 %v343_v34 }
 0x12a   :  { %690 = vmatpush3.bf16.msra.mxu1 %v343_v34 }
 0x12b   :  { %691 = vmatprep.subr.bf16.mxu1 %v342_v35 }
 0x12e   :  { %692 = vmatpush3.bf16.msra.mxu1 %v342_v35 }
 0x12f   :  { %693 = vmatprep.subr.bf16.mxu1 %v341_v36 }
 0x132   :  { %694 = vmatpush3.bf16.msra.mxu1 %v341_v36 }
 0x133   :  { %695 = vmatprep.subr.bf16.mxu1 %v340_v37 }
 0x136   :  { %696 = vmatpush3.bf16.msra.mxu1 %v340_v37 }
 0x137   :  { %697 = vmatprep.subr.bf16.mxu1 %v339_v38 }
 0x13a   :  { %698 = vmatpush3.bf16.msra.mxu1 %v339_v38 }
 0x13b   :  { %699 = vmatprep.subr.bf16.mxu1 %v338_v39 }
 0x13e   :  { %700 = vmatpush3.bf16.msra.mxu1 %v338_v39 }
 0x13f   :  { %701 = vmatprep.subr.bf16.mxu1 %v337_v40 }
 0x142   :  { %702 = vmatpush3.bf16.msra.mxu1 %v337_v40 }
 0x145   :  { %704 = vmatmul.mubr.bf16.vlgmr.msra.gmra.mxu1 %v744_v41 }
 0x146   :  { %707 = vmatprep.mubr.bf16.mxu1 %v745_v42 }
 0x14d   :  { %708 = vmatmul.mubr.bf16.gmra.mxu1 %v746_v43 }
 0x14e   :  { %711 = vmatprep.mubr.bf16.mxu1 %v747_v44 }
 0x155   :  { %712 = vmatmul.mubr.bf16.gmra.mxu1 %v748_v45 }
 0x156   :  { %715 = vmatprep.mubr.bf16.mxu1 %v749_v46 }
 0x15d   :  { %716 = vmatmul.mubr.bf16.gmra.mxu1 %v750_v47 }
 0x205   :  { %v705_v49 = vpop.f32.mrf.mxu1 }
 0x206   :  { %v550_v50 = vadd.f32 %v705_v49, %v622_v48 }
 0x207   :  { %v427_v51 = vpop.f32.mrf.mxu1 }
 0x208   :  { %566 = vst [vmem:[#allocation9 + $0x10] sm:$0xff] %v550_v50  ;;  %v548_v52 = vadd.f32 %v622_v48, %v427_v51 }
 0x209   :  { %v706_v53 = vpop.f32.mrf.mxu1 }
 0x20a   :  { %564 = vst [vmem:[#allocation9] sm:$0xff] %v548_v52  ;;  %v551_v54 = vadd.f32 %v706_v53, %v622_v48 }
 0x20b   :  { %v430_v55 = vpop.f32.mrf.mxu1 }
 0x20c   :  { %567 = vst [vmem:[#allocation9 + $0x18] sm:$0xff] %v551_v54  ;;  %v549_v56 = vadd.f32 %v622_v48, %v430_v55 }
 0x20d   :  { %v709_v57 = vpop.f32.mrf.mxu1 }
 0x20e   :  { %565 = vst [vmem:[#allocation9 + $0x8] sm:$0xff] %v549_v56  ;;  %v554_v58 = vadd.f32 %v709_v57, %v622_v48 }
 0x20f   :  { %v443_v59 = vpop.f32.mrf.mxu1 }
 0x210   :  { %570 = vst [vmem:[#allocation9 + $0x30] sm:$0xff] %v554_v58  ;;  %v552_v60 = vadd.f32 %v622_v48, %v443_v59 }
 0x211   :  { %v710_v61 = vpop.f32.mrf.mxu1 }
 0x212   :  { %568 = vst [vmem:[#allocation9 + $0x20] sm:$0xff] %v552_v60  ;;  %v555_v62 = vadd.f32 %v710_v61, %v622_v48 }
 0x213   :  { %v446_v63 = vpop.f32.mrf.mxu1 }
 0x214   :  { %571 = vst [vmem:[#allocation9 + $0x38] sm:$0xff] %v555_v62  ;;  %v553_v0 = vadd.f32 %v622_v48, %v446_v63 }
 0x215   :  { %v713_v1 = vpop.f32.mrf.mxu1 }
 0x216   :  { %569 = vst [vmem:[#allocation9 + $0x28] sm:$0xff] %v553_v0  ;;  %v558_v2 = vadd.f32 %v713_v1, %v622_v48 }
 0x217   :  { %v459_v3 = vpop.f32.mrf.mxu1 }
 0x218   :  { %574 = vst [vmem:[#allocation9 + $0x50] sm:$0xff] %v558_v2  ;;  %v556_v4 = vadd.f32 %v622_v48, %v459_v3 }
 0x219   :  { %v714_v5 = vpop.f32.mrf.mxu1 }
 0x21a   :  { %572 = vst [vmem:[#allocation9 + $0x40] sm:$0xff] %v556_v4  ;;  %v559_v6 = vadd.f32 %v714_v5, %v622_v48 }
 0x21b   :  { %v462_v7 = vpop.f32.mrf.mxu1 }
 0x21c   :  { %575 = vst [vmem:[#allocation9 + $0x58] sm:$0xff] %v559_v6  ;;  %v557_v8 = vadd.f32 %v622_v48, %v462_v7 }
 0x21d   :  { %v717_v9 = vpop.f32.mrf.mxu1 }
 0x21e   :  { %573 = vst [vmem:[#allocation9 + $0x48] sm:$0xff] %v557_v8  ;;  %v562_v10 = vadd.f32 %v717_v9, %v622_v48 }
 0x21f   :  { %v475_v11 = vpop.f32.mrf.mxu1 }
 0x220   :  { %578 = vst [vmem:[#allocation9 + $0x70] sm:$0xff] %v562_v10  ;;  %v560_v12 = vadd.f32 %v622_v48, %v475_v11 }
 0x221   :  { %v718_v13 = vpop.f32.mrf.mxu1 }
 0x222   :  { %576 = vst [vmem:[#allocation9 + $0x60] sm:$0xff] %v560_v12  ;;  %v563_v14 = vadd.f32 %v718_v13, %v622_v48 }
 0x223   :  { %v478_v15 = vpop.f32.mrf.mxu1 }
 0x224   :  { %579 = vst [vmem:[#allocation9 + $0x78] sm:$0xff] %v563_v14  ;;  %v561_v16 = vadd.f32 %v622_v48, %v478_v15 }
 0x226   :  { %577 = vst [vmem:[#allocation9 + $0x68] sm:$0xff] %v561_v16 }
 0x227   :  { %822 = shalt.err (!%p819_p5)
}
 0x228   :  { %s843_s7 = smov 128   ;;  %s844_s8 = smov 8  }
 0x229   :  { %591 = dma.vmem_to_hbm [thread:$0]  %s586_s5, 2048, %s889_s4, [#allocation5], %s843_s7, %s843_s7, %s844_s8  }
 0x22a   :  { %835 = dma.done.wait [#allocation5], 2048  }
 0x22b   :  { %836 = vsyncadd [#allocation5], 4294965248 }
 0x22c   :  { %595 = vsyncpa [#allocation4], 1 }
 0x22d   :  { %596 = vsyncpa [#allocation7], 1 }
 0x22e   :  { %597 = vsyncpa [#allocation5], 1 }

</bundles_post_ra>
